<compile_context>
chip_gen: v5e
topology: v5e:2x2
jax: 0.10.0
libtpu: 0.0.40
codegen_flags: <defaults>
</compile_context>

<pallas_src>
import jax
import jax.numpy as jnp
from jax.experimental import pallas as pl
from jax.experimental.pallas import tpu as pltpu

FEATURE_LENGTH = 128
DEFAULT_TILE_M = 2048                    # rows per grid step (multiple of 8)
_VMEM_LIMIT_BYTES = 32 * 1024 * 1024     # safe on v5e/v6e/v7x; >> ~7 MiB live


# ---------------------------------------------------------------------------
# Kernels: operate on (TILE_M, F) row tiles; weight (F, F) and bias (1, F)
# use constant index_maps so they stay VMEM-resident across the whole grid.
# ---------------------------------------------------------------------------
def _double_kernel(f1_ref, f2_ref, w_ref, b_ref, o_ref):
    # The 0.5 of the symmetric average is folded into w_ref at init time.
    s = f1_ref[...] + f2_ref[...]                                  # VPU add
    y = jnp.dot(s, w_ref[...], preferred_element_type=jnp.float32)  # MXU
    o_ref[...] = (y + b_ref[...]).astype(o_ref.dtype)


def _single_kernel(f_ref, w_ref, b_ref, o_ref):
    y = jnp.dot(f_ref[...], w_ref[...], preferred_element_type=jnp.float32)
    o_ref[...] = (y + b_ref[...]).astype(o_ref.dtype)


# ---------------------------------------------------------------------------
# Batched pallas_call wrapper (no host-side padding; ragged last block is
# masked by the Pallas pipeline).
# ---------------------------------------------------------------------------
def _choose_tile_m(m):
    m8 = max(8, ((m + 7) // 8) * 8)          # round rows up to a multiple of 8
    return min(DEFAULT_TILE_M, m8)


def _batched_affine(kernel, feats, w, b, tile_m):
    """feats: list of (M, F) f32 arrays; w: (F, F); b: (1, F)."""
    m, f_dim = feats[0].shape
    grid = (pl.cdiv(m, tile_m),)

    feat_spec = pl.BlockSpec((tile_m, f_dim), lambda i: (i, 0))
    w_spec = pl.BlockSpec(w.shape, lambda i: (0, 0))      # resident in VMEM
    b_spec = pl.BlockSpec(b.shape, lambda i: (0, 0))      # resident in VMEM
    out_spec = pl.BlockSpec((tile_m, f_dim), lambda i: (i, 0))

    cost = pl.CostEstimate(
        flops=2 * m * w.shape[0] * w.shape[1] + len(feats) * m * f_dim,
        transcendentals=0,
        bytes_accessed=4 * (len(feats) * m * f_dim + m * f_dim
                            + w.size + b.size),
    )

    return pl.pallas_call(
        kernel,
        out_shape=jax.ShapeDtypeStruct((m, f_dim), jnp.float32),
        grid=grid,
        in_specs=[feat_spec] * len(feats) + [w_spec, b_spec],
        out_specs=out_spec,
        compiler_params=pltpu.CompilerParams(
            dimension_semantics=("parallel",),
            vmem_limit_bytes=_VMEM_LIMIT_BYTES),
        cost_estimate=cost,
    )(*feats, w, b)


# ---------------------------------------------------------------------------
# Module
# ---------------------------------------------------------------------------
class NNCYKFeatureCombingNonPreterminate:
    """JAX/Pallas port of the PyTorch module (deterministic synthetic params).

    Accepts either single feature vectors of shape (F,) (original module
    semantics; computed with plain jnp -- kernel launch overhead dwarfs the
    work) or batched feature matrices of shape (M, F) (Pallas kernel path for
    the CYK driver, which stacks many cell pairs into one launch).
    """

    def __init__(self, feature_length=FEATURE_LENGTH, key=None):
        self.feature_length = feature_length
        if key is None:
            key = jax.random.PRNGKey(42)
        k1, k2, k3, k4 = jax.random.split(key, 4)
        F = feature_length
        # nn.Linear default init: U(-1/sqrt(fan_in), 1/sqrt(fan_in))
        bnd_single = 1.0 / jnp.sqrt(jnp.float32(F))
        bnd_double = 1.0 / jnp.sqrt(jnp.float32(2 * F))
        # single-symbol: W (F, F) stored transposed as (in, out)
        self.ws_t = jax.random.uniform(k1, (F, F), jnp.float32,
                                       -bnd_single, bnd_single)
        self.bs = jax.random.uniform(k2, (F,), jnp.float32,
                                     -bnd_single, bnd_single)
        # double-symbol: W (F, 2F) stored transposed as (2F, F)
        self.wd_t = jax.random.uniform(k3, (2 * F, F), jnp.float32,
                                       -bnd_double, bnd_double)
        self.bd = jax.random.uniform(k4, (F,), jnp.float32,
                                     -bnd_double, bnd_double)
        # Exact algebraic fold of the symmetric double-symbol path, with the
        # 1/2 of the average folded into the weight:
        #   (cat(f1,f2)@Wd.T + cat(f2,f1)@Wd.T)/2 + bd
        #     == (f1 + f2) @ ((Wd_top + Wd_bot).T * 0.5) + bd
        self.wd_half = (self.wd_t[:F] + self.wd_t[F:]) * 0.5      # (F, F)
        # 2-D biases for lane-mapped broadcast inside the kernel.
        self._bs2d = self.bs.reshape(1, F)
        self._bd2d = self.bd.reshape(1, F)

    # -- internal helpers ---------------------------------------------------
    def _run_single(self, f):
        if f.ndim == 1:
            # Single-vector API path: plain GEMV (see module docstring).
            return f.astype(jnp.float32) @ self.ws_t + self.bs
        f2d = f.astype(jnp.float32)
        tile_m = _choose_tile_m(f2d.shape[0])
        return _batched_affine(_single_kernel, [f2d],
                               self.ws_t, self._bs2d, tile_m)

    def _run_double(self, f1, f2):
        if f1.shape != f2.shape:
            raise ValueError(
                f"feature1/feature2 shape mismatch: {f1.shape} vs {f2.shape}")
        if f1.ndim == 1:
            # Single-vector API path: plain GEMV (see module docstring).
            s = f1.astype(jnp.float32) + f2.astype(jnp.float32)
            return s @ self.wd_half + self.bd
        f1_2d = f1.astype(jnp.float32)
        f2_2d = f2.astype(jnp.float32)
        tile_m = _choose_tile_m(f1_2d.shape[0])
        return _batched_affine(_double_kernel, [f1_2d, f2_2d],
                               self.wd_half, self._bd2d, tile_m)

    # -- public API (mirrors the PyTorch forward) ---------------------------
    def __call__(self, feature1=None, feature2=None):
        if feature1 is None and feature2 is None:
            return jnp.zeros(self.feature_length, jnp.float32)
        if feature1 is None:
            return self._run_single(feature2)
        if feature2 is None:
            return self._run_single(feature1)
        return self._run_double(feature1, feature2)


# ---------------------------------------------------------------------------
# Pure-JAX reference (uses the ORIGINAL un-folded formulation)
# ---------------------------------------------------------------------------
def _reference(model, feature1=None, feature2=None):
    if feature1 is None and feature2 is None:
        return jnp.zeros(model.feature_length, jnp.float32)
    if feature1 is None:
        return feature2 @ model.ws_t + model.bs
    if feature2 is None:
        return feature1 @ model.ws_t + model.bs
    c1 = jnp.concatenate([feature1, feature2], axis=-1)
    c2 = jnp.concatenate([feature2, feature1], axis=-1)
    y1 = c1 @ model.wd_t + model.bd
    y2 = c2 @ model.wd_t + model.bd
    return (y1 + y2) / 2.0


if __name__ == "__main__":
    key = jax.random.PRNGKey(0)
    kf1, kf2, kb1, kb2, kr1, kr2, kparams = jax.random.split(key, 7)

    model = NNCYKFeatureCombingNonPreterminate(FEATURE_LENGTH, key=kparams)

    # --- single-vector semantics (matches the PyTorch forward) -------------
    feature1 = jax.random.normal(kf1, (FEATURE_LENGTH,), jnp.float32)
    feature2 = jax.random.normal(kf2, (FEATURE_LENGTH,), jnp.float32)

    out_double = model(feature1, feature2)
    jax.block_until_ready(out_double)
    ref_double = _reference(model, feature1, feature2)
    assert out_double.shape == (FEATURE_LENGTH,)
    assert jnp.allclose(out_double, ref_double, atol=1e-4, rtol=1e-4)

    out_single = model(None, feature2)
    jax.block_until_ready(out_single)
    ref_single = _reference(model, None, feature2)
    assert jnp.allclose(out_single, ref_single, atol=1e-4, rtol=1e-4)

    out_none = model(None, None)
    jax.block_until_ready(out_none)
    assert jnp.all(out_none == 0.0)

    # --- batched CYK-style path (Pallas kernel) -----------------------------
    M = 64
    b1 = jax.random.normal(kb1, (M, FEATURE_LENGTH), jnp.float32)
    b2 = jax.random.normal(kb2, (M, FEATURE_LENGTH), jnp.float32)

    out_batch = model(b1, b2)
    jax.block_until_ready(out_batch)
    ref_batch = _reference(model, b1, b2)
    assert out_batch.shape == (M, FEATURE_LENGTH)
    assert jnp.allclose(out_batch, ref_batch, atol=1e-4, rtol=1e-4)

    out_batch_single = model(b1, None)
    jax.block_until_ready(out_batch_single)
    ref_batch_single = _reference(model, b1, None)
    assert jnp.allclose(out_batch_single, ref_batch_single,
                        atol=1e-4, rtol=1e-4)

    # --- ragged batch (exercises the masked partial last block, no padding) -
    Mr = 45
    r1 = jax.random.normal(kr1, (Mr, FEATURE_LENGTH), jnp.float32)
    r2 = jax.random.normal(kr2, (Mr, FEATURE_LENGTH), jnp.float32)

    out_ragged = model(r1, r2)
    jax.block_until_ready(out_ragged)
    ref_ragged = _reference(model, r1, r2)
    assert out_ragged.shape == (Mr, FEATURE_LENGTH)
    assert jnp.allclose(out_ragged, ref_ragged, atol=1e-4, rtol=1e-4)

    out_ragged_single = model(None, r2)
    jax.block_until_ready(out_ragged_single)
    ref_ragged_single = _reference(model, None, r2)
    assert jnp.allclose(out_ragged_single, ref_ragged_single,
                        atol=1e-4, rtol=1e-4)

    print("KERNEL_OK")
</pallas_src>

<mosaic_0001>
module attributes {stable_mosaic.version = 11 : i64} {
  func.func @_double_kernel(%arg0: i32, %arg1: memref<64x128xf32, #tpu.memory_space<vmem>>, %arg2: memref<64x128xf32, #tpu.memory_space<vmem>>, %arg3: memref<128x128xf32, #tpu.memory_space<vmem>>, %arg4: memref<1x128xf32, #tpu.memory_space<vmem>>, %arg5: memref<64x128xf32, #tpu.memory_space<vmem>>) attributes {dimension_semantics = [#tpu.dimension_semantics<parallel>], iteration_bounds = array<i64: 1>, scalar_prefetch = 0 : i64, scratch_operands = 0 : i64, tpu.core_type = #tpu.core_type<tc>, window_params = [{transform_indices = @transform_0, window_bounds = array<i64: 64, 128>}, {transform_indices = @transform_1, window_bounds = array<i64: 64, 128>}, {pipeline_mode = #tpu.pipeline_mode<synchronous>, transform_indices = @transform_2, window_bounds = array<i64: 128, 128>}, {pipeline_mode = #tpu.pipeline_mode<synchronous>, transform_indices = @transform_3, window_bounds = array<i64: 1, 128>}, {transform_indices = @transform_4, window_bounds = array<i64: 64, 128>}]} {
    %c0 = arith.constant 0 : index
    %c0_0 = arith.constant 0 : index
    %0 = vector.load %arg1[%c0, %c0_0] : memref<64x128xf32, #tpu.memory_space<vmem>>, vector<64x128xf32>
    %c0_1 = arith.constant 0 : index
    %c0_2 = arith.constant 0 : index
    %1 = vector.load %arg2[%c0_1, %c0_2] : memref<64x128xf32, #tpu.memory_space<vmem>>, vector<64x128xf32>
    %2 = arith.addf %0, %1 : vector<64x128xf32>
    %c0_3 = arith.constant 0 : index
    %c0_4 = arith.constant 0 : index
    %3 = vector.load %arg3[%c0_3, %c0_4] : memref<128x128xf32, #tpu.memory_space<vmem>>, vector<128x128xf32>
    %cst = arith.constant dense<0.000000e+00> : vector<64x128xf32>
    %4 = tpu.matmul %2, %3, %cst {dimension_numbers = #tpu.dot_dimension_numbers<[1], [0], [0], [1], [0, 0, 1, 1], [], []>} : vector<64x128xf32>, vector<128x128xf32>, vector<64x128xf32> -> vector<64x128xf32>
    %c0_5 = arith.constant 0 : index
    %c0_6 = arith.constant 0 : index
    %5 = vector.load %arg4[%c0_5, %c0_6] : memref<1x128xf32, #tpu.memory_space<vmem>>, vector<1x128xf32>
    %6 = vector.broadcast %5 : vector<1x128xf32> to vector<64x128xf32>
    %7 = arith.addf %4, %6 : vector<64x128xf32>
    %c0_7 = arith.constant 0 : index
    %c0_8 = arith.constant 0 : index
    %8 = vector.load %arg5[%c0_7, %c0_8] : memref<64x128xf32, #tpu.memory_space<vmem>>, vector<64x128xf32>
    tpu.vector_store %arg5[%c0_7, %c0_8], %7 {strides = array<i32>} : memref<64x128xf32, #tpu.memory_space<vmem>>, vector<64x128xf32>,
    return
  }
  func.func @transform_0(%arg0: i32) -> (i32, i32) {
    %c0_i32 = arith.constant 0 : i32
    %c0_i32_0 = arith.constant 0 : i32
    return %arg0, %c0_i32 : i32, i32
  }
  func.func @transform_1(%arg0: i32) -> (i32, i32) {
    %c0_i32 = arith.constant 0 : i32
    %c0_i32_0 = arith.constant 0 : i32
    return %arg0, %c0_i32 : i32, i32
  }
  func.func @transform_2(%arg0: i32) -> (i32, i32) {
    %c0_i32 = arith.constant 0 : i32
    %c0_i32_0 = arith.constant 0 : i32
    %c0_i32_1 = arith.constant 0 : i32
    return %c0_i32, %c0_i32_0 : i32, i32
  }
  func.func @transform_3(%arg0: i32) -> (i32, i32) {
    %c0_i32 = arith.constant 0 : i32
    %c0_i32_0 = arith.constant 0 : i32
    %c0_i32_1 = arith.constant 0 : i32
    return %c0_i32, %c0_i32_0 : i32, i32
  }
  func.func @transform_4(%arg0: i32) -> (i32, i32) {
    %c0_i32 = arith.constant 0 : i32
    %c0_i32_0 = arith.constant 0 : i32
    return %arg0, %c0_i32 : i32, i32
  }
}

</mosaic_0001>

<bundles_post_ra>
// kernel: tpu_custom_call.1
= control target key start
LH: loop header
LB: loop body
LE: loop exit
PB: predicated region body
PF: predicated region fallthrough
CT: control target
= control target key end

     0   :  { %9 = vsyncpa [#allocation3], 0  ;;  %s393_s0 = inlined_call_operand.hbm [shape: f32[64,128], index: 0, kind: input, shape index: {}]   ;;  %s394_s1 = inlined_call_operand.hbm [shape: f32[64,128], index: 1, kind: input, shape index: {}]   ;;  %s395_s2 = inlined_call_operand.hbm [shape: f32[128,128], index: 2, kind: input, shape index: {}]   ;;  %s396_s3 = inlined_call_operand.vmem [shape: f32[1,128], index: 3, kind: input, shape index: {}]   ;;  %s397_s4 = inlined_call_operand.hbm [shape: f32[64,128], index: 4, kind: output, shape index: {}]  }
   0x1   :  { %10 = vsyncpa [#allocation6], 0 }
   0x2   :  { %11 = vsyncpa [#allocation4], 0  ;;  %s29_s17 = sshll.u32 %s394_s1, 4  ;;  %s335_s18 = smov [#allocation5]   ;;  %s30_s17 = int_to_ptr.hbm [resolvable:$true] %s29_s17 }
   0x3   :  { %s31_s19 = sshll.u32 %s335_s18, 4  ;;  %s16_s22 = sshll.u32 %s393_s0, 4  ;;  %s32_s19 = int_to_ptr.vmem [resolvable:$true] %s31_s19  ;;  %s17_s22 = int_to_ptr.hbm [resolvable:$true] %s16_s22 }
   0x4   :  { %s336_s23 = smov 128   ;;  %s337_s24 = smov 8  }
   0x5   :  { %37 = dma.hbm_to_vmem [thread:$0]  %s30_s17, 1024, %s32_s19, [#allocation6], %s336_s23, %s336_s23, %s337_s24  }
   0x6   :  { %s338_s25 = smov [#allocation2]   ;;  %s42_s1 = sshll.u32 %s395_s2, 4  ;;  %s43_s1 = int_to_ptr.hbm [resolvable:$true] %s42_s1 }
   0x7   :  { %s18_s26 = sshll.u32 %s338_s25, 4  ;;  %s339_s0 = smov [#allocation7]   ;;  %s19_s26 = int_to_ptr.vmem [resolvable:$true] %s18_s26 }
   0x8   :  { %24 = dma.hbm_to_vmem [thread:$0]  %s17_s22, 1024, %s19_s26, [#allocation3], %s336_s23, %s336_s23, %s337_s24  }
   0x9   :  { %s44_s29 = sshll.u32 %s339_s0, 4  ;;  %s45_s29 = int_to_ptr.vmem [resolvable:$true] %s44_s29 }
   0xa   :  { %50 = dma.hbm_to_vmem [thread:$0]  %s43_s1, 2048, %s45_s29, [#allocation6], %s336_s23, %s336_s23, %s337_s24  }
   0xb   :  { %329 = dma.done.wait [#allocation3], 1024  }
   0xc   :  { %330 = vsyncadd [#allocation3], 4294966272 }
   0xd   :  { %331 = dma.done.wait [#allocation6], 3072  }
   0xe   :  { %332 = vsyncadd [#allocation6], 4294964224  ;;  %v104_v0 = vld [vmem:[#allocation7 + $0x78] sm:$0xff]  ;;  %v103_v1 = vld [vmem:[#allocation7 + $0x70] sm:$0xff]  ;;  %s340_s5 = smov [#allocation8]   ;;  %s164_s8 = sshll.u32 %s397_s4, 4  ;;  %s165_s8 = int_to_ptr.hbm [resolvable:$true] %s164_s8 }
   0xf   :  { %179 = vmatpush.msra.mxu2 %v104_v0  ;;  %180 = vmatpush.msra.mxu3 %v104_v0  ;;  %v102_v2 = vld [vmem:[#allocation7 + $0x68] sm:$0xff]  ;;  %v101_v3 = vld [vmem:[#allocation7 + $0x60] sm:$0xff]  ;;  %v100_v4 = vld [vmem:[#allocation7 + $0x58] sm:$0xff]  ;;  %s162_s6 = sshll.u32 %s340_s5, 4  ;;  %s163_s6 = int_to_ptr.vmem [resolvable:$true] %s162_s6 }
  0x10   :  { %109 = vmatpush.msra.mxu0 %v104_v0  ;;  %178 = vmatpush.msra.mxu1 %v104_v0  ;;  %v99_v5 = vld [vmem:[#allocation7 + $0x50] sm:$0xff]  ;;  %v98_v6 = vld [vmem:[#allocation7 + $0x48] sm:$0xff]  ;;  %v97_v7 = vld [vmem:[#allocation7 + $0x40] sm:$0xff] }
  0x11   :  { %182 = vmatpush.msra.mxu2 %v103_v1  ;;  %183 = vmatpush.msra.mxu3 %v103_v1  ;;  %v96_v8 = vld [vmem:[#allocation7 + $0x38] sm:$0xff]  ;;  %v95_v9 = vld [vmem:[#allocation7 + $0x30] sm:$0xff]  ;;  %v94_v10 = vld [vmem:[#allocation7 + $0x28] sm:$0xff] }
  0x12   :  { %110 = vmatpush.msra.mxu0 %v103_v1  ;;  %181 = vmatpush.msra.mxu1 %v103_v1  ;;  %v93_v11 = vld [vmem:[#allocation7 + $0x20] sm:$0xff]  ;;  %v92_v12 = vld [vmem:[#allocation7 + $0x18] sm:$0xff]  ;;  %v91_v13 = vld [vmem:[#allocation7 + $0x10] sm:$0xff] }
  0x13   :  { %185 = vmatpush.msra.mxu2 %v102_v2  ;;  %186 = vmatpush.msra.mxu3 %v102_v2  ;;  %v69_v14 = vld [vmem:[#allocation2 + $0x20] sm:$0xff]  ;;  %v71_v16 = vld [vmem:[#allocation2 + $0x30] sm:$0xff]  ;;  %v90_v18 = vld [vmem:[#allocation7 + $0x8] sm:$0xff] }
  0x14   :  { %111 = vmatpush.msra.mxu0 %v102_v2  ;;  %184 = vmatpush.msra.mxu1 %v102_v2  ;;  %v77_v15 = vld [vmem:[#allocation5 + $0x20] sm:$0xff]  ;;  %v79_v17 = vld [vmem:[#allocation5 + $0x30] sm:$0xff]  ;;  %v70_v28 = vld [vmem:[#allocation2 + $0x28] sm:$0xff] }
  0x15   :  { %188 = vmatpush.msra.mxu2 %v101_v3  ;;  %189 = vmatpush.msra.mxu3 %v101_v3  ;;  %v65_v19 = vld [vmem:[#allocation2] sm:$0xff]  ;;  %v67_v21 = vld [vmem:[#allocation2 + $0x10] sm:$0xff]  ;;  %v85_v24 = vadd.f32 %v77_v15, %v69_v14  ;;  %v87_v25 = vadd.f32 %v79_v17, %v71_v16  ;;  %v78_v29 = vld [vmem:[#allocation5 + $0x28] sm:$0xff] }
  0x16   :  { %112 = vmatpush.msra.mxu0 %v101_v3  ;;  %187 = vmatpush.msra.mxu1 %v101_v3  ;;  %v73_v20 = vld [vmem:[#allocation5] sm:$0xff]  ;;  %v75_v22 = vld [vmem:[#allocation5 + $0x10] sm:$0xff]  ;;  %v72_v30 = vld [vmem:[#allocation2 + $0x38] sm:$0xff]  ;;  %v86_v36 = vadd.f32 %v78_v29, %v70_v28 }
  0x17   :  { %191 = vmatpush.msra.mxu2 %v100_v4  ;;  %192 = vmatpush.msra.mxu3 %v100_v4  ;;  %v89_v23 = vld [vmem:[#allocation7] sm:$0xff]  ;;  %v81_v26 = vadd.f32 %v73_v20, %v65_v19  ;;  %v83_v27 = vadd.f32 %v75_v22, %v67_v21  ;;  %v80_v31 = vld [vmem:[#allocation5 + $0x38] sm:$0xff]  ;;  %v66_v32 = vld [vmem:[#allocation2 + $0x8] sm:$0xff] }
  0x18   :  { %113 = vmatpush.msra.mxu0 %v100_v4  ;;  %190 = vmatpush.msra.mxu1 %v100_v4  ;;  %v74_v33 = vld [vmem:[#allocation5 + $0x8] sm:$0xff]  ;;  %v68_v34 = vld [vmem:[#allocation2 + $0x18] sm:$0xff]  ;;  %v88_v37 = vadd.f32 %v80_v31, %v72_v30  ;;  %v232_v40 = vld [vmem:[%s396_s3] ss:$0 sm:$0xff] }
  0x19   :  { %194 = vmatpush.msra.mxu2 %v99_v5  ;;  %195 = vmatpush.msra.mxu3 %v99_v5  ;;  %v76_v35 = vld [vmem:[#allocation5 + $0x18] sm:$0xff]  ;;  %v82_v38 = vadd.f32 %v74_v33, %v66_v32 }
  0x1a   :  { %114 = vmatpush.msra.mxu0 %v99_v5  ;;  %193 = vmatpush.msra.mxu1 %v99_v5  ;;  %v84_v39 = vadd.f32 %v76_v35, %v68_v34 }
  0x1b   :  { %197 = vmatpush.msra.mxu2 %v98_v6  ;;  %198 = vmatpush.msra.mxu3 %v98_v6 }
  0x1c   :  { %115 = vmatpush.msra.mxu0 %v98_v6  ;;  %196 = vmatpush.msra.mxu1 %v98_v6 }
  0x1d   :  { %200 = vmatpush.msra.mxu2 %v97_v7  ;;  %201 = vmatpush.msra.mxu3 %v97_v7 }
  0x1e   :  { %116 = vmatpush.msra.mxu0 %v97_v7  ;;  %199 = vmatpush.msra.mxu1 %v97_v7 }
  0x1f   :  { %203 = vmatpush.msra.mxu2 %v96_v8  ;;  %204 = vmatpush.msra.mxu3 %v96_v8 }
  0x20   :  { %117 = vmatpush.msra.mxu0 %v96_v8  ;;  %202 = vmatpush.msra.mxu1 %v96_v8 }
  0x21   :  { %206 = vmatpush.msra.mxu2 %v95_v9  ;;  %207 = vmatpush.msra.mxu3 %v95_v9 }
  0x22   :  { %118 = vmatpush.msra.mxu0 %v95_v9  ;;  %205 = vmatpush.msra.mxu1 %v95_v9 }
  0x23   :  { %209 = vmatpush.msra.mxu2 %v94_v10  ;;  %210 = vmatpush.msra.mxu3 %v94_v10 }
  0x24   :  { %119 = vmatpush.msra.mxu0 %v94_v10  ;;  %208 = vmatpush.msra.mxu1 %v94_v10 }
  0x25   :  { %212 = vmatpush.msra.mxu2 %v93_v11  ;;  %213 = vmatpush.msra.mxu3 %v93_v11 }
  0x26   :  { %120 = vmatpush.msra.mxu0 %v93_v11  ;;  %211 = vmatpush.msra.mxu1 %v93_v11 }
  0x27   :  { %215 = vmatpush.msra.mxu2 %v92_v12  ;;  %216 = vmatpush.msra.mxu3 %v92_v12 }
  0x28   :  { %121 = vmatpush.msra.mxu0 %v92_v12  ;;  %214 = vmatpush.msra.mxu1 %v92_v12 }
  0x29   :  { %218 = vmatpush.msra.mxu2 %v91_v13  ;;  %219 = vmatpush.msra.mxu3 %v91_v13 }
  0x2a   :  { %122 = vmatpush.msra.mxu0 %v91_v13  ;;  %217 = vmatpush.msra.mxu1 %v91_v13 }
  0x2b   :  { %221 = vmatpush.msra.mxu2 %v90_v18  ;;  %222 = vmatpush.msra.mxu3 %v90_v18 }
  0x2c   :  { %123 = vmatpush.msra.mxu0 %v90_v18  ;;  %220 = vmatpush.msra.mxu1 %v90_v18 }
  0x2d   :  { %224 = vmatpush.msra.mxu2 %v89_v23  ;;  %225 = vmatpush.msra.mxu3 %v89_v23 }
  0x2e   :  { %137 = vmatmul.f32.vlgmr.msra.gmra.mxu2 %v85_v24  ;;  %143 = vmatmul.f32.vlgmr.msra.gmra.mxu3 %v87_v25 }
  0x2f   :  { %124 = vmatpush.msra.mxu0 %v89_v23  ;;  %223 = vmatpush.msra.mxu1 %v89_v23 }
  0x30   :  { %125 = vmatmul.f32.vlgmr.msra.gmra.mxu0 %v81_v26  ;;  %131 = vmatmul.f32.vlgmr.msra.gmra.mxu1 %v83_v27 }
  0x36   :  { %140 = vmatmul.f32.gmra.mxu2 %v86_v36  ;;  %146 = vmatmul.f32.gmra.mxu3 %v88_v37 }
  0x38   :  { %128 = vmatmul.f32.gmra.mxu0 %v82_v38  ;;  %134 = vmatmul.f32.gmra.mxu1 %v84_v39 }
  0xad   :  { %v126_v41 = vpop.f32.mrf.mxu0  ;;  %v132_v42 = vpop.f32.mrf.mxu1 }
  0xae   :  { %v127_v43 = vadd.f32 %v232_v40, %v126_v41  ;;  %v133_v44 = vadd.f32 %v232_v40, %v132_v42 }
  0xb0   :  { %150 = vst [vmem:[#allocation8] sm:$0xff] %v127_v43 }
  0xb1   :  { %152 = vst [vmem:[#allocation8 + $0x10] sm:$0xff] %v133_v44  ;;  %v138_v45 = vpop.f32.mrf.mxu2  ;;  %v144_v46 = vpop.f32.mrf.mxu3 }
  0xb2   :  { %v139_v47 = vadd.f32 %v232_v40, %v138_v45  ;;  %v145_v48 = vadd.f32 %v232_v40, %v144_v46 }
  0xb4   :  { %154 = vst [vmem:[#allocation8 + $0x20] sm:$0xff] %v139_v47 }
  0xb5   :  { %156 = vst [vmem:[#allocation8 + $0x30] sm:$0xff] %v145_v48  ;;  %v129_v49 = vpop.f32.mrf.mxu0  ;;  %v135_v50 = vpop.f32.mrf.mxu1 }
  0xb6   :  { %v130_v51 = vadd.f32 %v232_v40, %v129_v49  ;;  %v136_v52 = vadd.f32 %v232_v40, %v135_v50 }
  0xb8   :  { %151 = vst [vmem:[#allocation8 + $0x8] sm:$0xff] %v130_v51 }
  0xb9   :  { %153 = vst [vmem:[#allocation8 + $0x18] sm:$0xff] %v136_v52  ;;  %v141_v53 = vpop.f32.mrf.mxu2  ;;  %v147_v54 = vpop.f32.mrf.mxu3 }
  0xba   :  { %v142_v55 = vadd.f32 %v232_v40, %v141_v53  ;;  %v148_v56 = vadd.f32 %v232_v40, %v147_v54 }
  0xbc   :  { %155 = vst [vmem:[#allocation8 + $0x28] sm:$0xff] %v142_v55 }
  0xbd   :  { %157 = vst [vmem:[#allocation8 + $0x38] sm:$0xff] %v148_v56 }
  0xbe   :  { %170 = dma.vmem_to_hbm [thread:$0]  %s163_s6, 1024, %s165_s8, [#allocation4], %s336_s23, %s336_s23, %s337_s24  }
  0xbf   :  { %333 = dma.done.wait [#allocation4], 1024  }
  0xc0   :  { %334 = vsyncadd [#allocation4], 4294966272 }
  0xc1   :  { %175 = vsyncpa [#allocation3], 1 }
  0xc2   :  { %176 = vsyncpa [#allocation6], 1 }
  0xc3   :  { %177 = vsyncpa [#allocation4], 1 }

</bundles_post_ra>
